<compile_context>
chip_gen: v6e
topology: v6e:2x2x1
jax: 0.10.0
libtpu: 0.0.40
codegen_flags: <defaults>
</compile_context>

<pallas_src>
import functools

import jax
import jax.numpy as jnp
from jax.experimental import pallas as pl
from jax.experimental.pallas import tpu as pltpu

_LANES = 128
_SUBLANES = 8
_ROWS_PER_TILE = 2048          # 2048 * 128 * 4B = 1 MiB per stream per buffer
_MAX_SINGLE_TILE_ROWS = 4096   # below this, a single block (overhead-dominated)


def _choose_tiling(n_elems):
    """Returns (tile_rows, num_tiles) for the lane-dense (rows, 128) layout."""
    rows = pl.cdiv(n_elems, _LANES)
    if rows <= _MAX_SINGLE_TILE_ROWS:
        tile_rows = pl.cdiv(rows, _SUBLANES) * _SUBLANES   # 8-aligned single tile
        return tile_rows, 1
    return _ROWS_PER_TILE, pl.cdiv(rows, _ROWS_PER_TILE)


def _to_lane_dense(a, rows_padded):
    """Flatten to (rows_padded, 128) f32, zero-padding the tail if needed."""
    flat = a.astype(jnp.float32).reshape(-1)
    pad = rows_padded * _LANES - flat.shape[0]
    if pad:
        flat = jnp.pad(flat, (0, pad))
    return flat.reshape(rows_padded, _LANES)


def _padding_mask(shape, tile_rows, n_valid):
    """Mask (True = keep) of elements whose flat index is < n_valid."""
    row0 = pl.program_id(0) * tile_rows
    r = jax.lax.broadcasted_iota(jnp.int32, shape, 0)
    l = jax.lax.broadcasted_iota(jnp.int32, shape, 1)
    flat = (row0 + r) * _LANES + l
    return flat < n_valid


def _compiler_params():
    return pltpu.CompilerParams(
        dimension_semantics=("arbitrary",),      # row axis carries the loss reduction
        vmem_limit_bytes=32 * 1024 * 1024,
    )


# --------------------------------------------------------------------------
# Kernels
# --------------------------------------------------------------------------
def _bce_loss_kernel(x_ref, t_ref, loss_ref, *, n_valid, n_covered):
    """epoch <= Es path: sum of stable BCE-with-logits against given targets."""
    i = pl.program_id(0)

    @pl.when(i == 0)
    def _():
        loss_ref[...] = jnp.zeros_like(loss_ref)

    x = x_ref[...]
    t = t_ref[...]
    e = jnp.exp(-jnp.abs(x))                              # single transcendental
    per = jnp.maximum(x, 0.0) - x * t + jnp.log1p(e)
    if n_valid != n_covered:                              # static: mask tail padding
        per = jnp.where(_padding_mask(per.shape, x_ref.shape[0], n_valid), per, 0.0)
    loss_ref[...] = loss_ref[...] + jnp.sum(per)


def _ema_loss_kernel(x_ref, s_ref, loss_ref, newt_ref, *, n_valid, n_covered):
    """epoch > Es path: t = 0.9*stored + 0.1*sigmoid(x); emits t and the loss sum."""
    i = pl.program_id(0)

    @pl.when(i == 0)
    def _():
        loss_ref[...] = jnp.zeros_like(loss_ref)

    x = x_ref[...]
    s = s_ref[...]

    e = jnp.exp(-jnp.abs(x))                    # shared between sigmoid & softplus
    r = pl.reciprocal(1.0 + e, approx=True)     # EUP vrcp (off the VALU path)
    preds = jnp.where(x >= 0.0, r, e * r)       # sigmoid(x), numerically stable
    t = 0.9 * s + 0.1 * preds
    newt_ref[...] = t                           # full-lane unmasked vector stores

    per = jnp.maximum(x, 0.0) - x * t + jnp.log1p(e)
    if n_valid != n_covered:
        per = jnp.where(_padding_mask(per.shape, x_ref.shape[0], n_valid), per, 0.0)
    loss_ref[...] = loss_ref[...] + jnp.sum(per)


# --------------------------------------------------------------------------
# Wrappers
# --------------------------------------------------------------------------
@jax.jit
def sat_bce_pallas(logits, targets):
    """mean(BCEWithLogits(logits, targets)) over all elements."""
    n = logits.size
    tile_rows, num_tiles = _choose_tiling(n)
    rows_padded = tile_rows * num_tiles
    n_covered = rows_padded * _LANES

    x = _to_lane_dense(logits, rows_padded)
    t = _to_lane_dense(targets, rows_padded)

    kernel = functools.partial(_bce_loss_kernel, n_valid=n, n_covered=n_covered)
    loss_sum = pl.pallas_call(
        kernel,
        grid_spec=pltpu.PrefetchScalarGridSpec(
            num_scalar_prefetch=0,
            grid=(num_tiles,),
            in_specs=[pl.BlockSpec((tile_rows, _LANES), lambda i: (i, 0)),
                      pl.BlockSpec((tile_rows, _LANES), lambda i: (i, 0))],
            out_specs=pl.BlockSpec((1, 1), lambda i: (0, 0)),
        ),
        out_shape=jax.ShapeDtypeStruct((1, 1), jnp.float32),
        compiler_params=_compiler_params(),
    )(x, t)
    return loss_sum[0, 0] / n


@jax.jit
def sat_ema_pallas(logits, stored):
    """EMA path: returns (mean loss, new soft targets of shape (B, C))."""
    B, C = logits.shape
    n = B * C
    tile_rows, num_tiles = _choose_tiling(n)
    rows_padded = tile_rows * num_tiles
    n_covered = rows_padded * _LANES

    x = _to_lane_dense(logits, rows_padded)
    s = _to_lane_dense(stored, rows_padded)

    kernel = functools.partial(_ema_loss_kernel, n_valid=n, n_covered=n_covered)
    loss_sum, new_flat = pl.pallas_call(
        kernel,
        grid_spec=pltpu.PrefetchScalarGridSpec(
            num_scalar_prefetch=0,
            grid=(num_tiles,),
            in_specs=[pl.BlockSpec((tile_rows, _LANES), lambda i: (i, 0)),
                      pl.BlockSpec((tile_rows, _LANES), lambda i: (i, 0))],
            out_specs=[pl.BlockSpec((1, 1), lambda i: (0, 0)),
                       pl.BlockSpec((tile_rows, _LANES), lambda i: (i, 0))],
        ),
        out_shape=(jax.ShapeDtypeStruct((1, 1), jnp.float32),
                   jax.ShapeDtypeStruct((rows_padded, _LANES), jnp.float32)),
        compiler_params=_compiler_params(),
    )(x, s)

    loss = loss_sum[0, 0] / n
    new_t = new_flat.reshape(-1)[:n].reshape(B, C)
    return loss, new_t


# --------------------------------------------------------------------------
# SAT module (stateful targets table), matching the PyTorch semantics
# --------------------------------------------------------------------------
class SAT:
    def __init__(self, num_train, num_classes, Es):
        self.targets = jnp.zeros((num_train, num_classes), jnp.float32)
        self.epoch = 1
        self.Es = Es

    def end_of_epoch(self):
        self.epoch += 1

    def forward(self, logits, labels, index):
        if self.epoch == 1:
            self.targets = self.targets.at[index].set(labels.astype(jnp.float32))
        if self.epoch > self.Es:
            # Gather / scatter of the persistent table stays in XLA (see TODO above).
            stored = self.targets[index]
            loss, new_t = sat_ema_pallas(logits, stored)
            self.targets = self.targets.at[index].set(new_t)
        else:
            loss = sat_bce_pallas(logits, labels)
        return loss


if __name__ == "__main__":
    num_train, num_classes, batch, Es = 16, 32, 8, 1

    key = jax.random.PRNGKey(0)
    k1, k2, k3 = jax.random.split(key, 3)
    logits = jax.random.normal(k1, (batch, num_classes), dtype=jnp.float32)
    labels = (jax.random.uniform(k2, (batch, num_classes)) > 0.5).astype(jnp.float32)
    index = jax.random.permutation(k3, num_train)[:batch]

    sat = SAT(num_train, num_classes, Es)

    # epoch 1 (<= Es): BCE against the hard labels; targets table seeded.
    loss1 = sat.forward(logits, labels, index)
    sat.end_of_epoch()

    # epoch 2 (> Es): EMA soft-target path + targets-table update.
    loss2 = sat.forward(logits, labels, index)

    jax.block_until_ready((loss1, loss2, sat.targets))

    # pure-JAX references
    def bce_ref(x, t):
        return jnp.mean(jnp.maximum(x, 0.0) - x * t + jnp.log1p(jnp.exp(-jnp.abs(x))))

    ref1 = bce_ref(logits, labels)
    preds = jax.nn.sigmoid(logits)
    t2 = 0.9 * labels + 0.1 * preds
    ref2 = bce_ref(logits, t2)

    assert jnp.allclose(loss1, ref1, rtol=1e-5, atol=1e-5), (loss1, ref1)
    # EMA path uses the EUP approx reciprocal for sigmoid -> slightly looser tol.
    assert jnp.allclose(loss2, ref2, rtol=1e-3, atol=1e-3), (loss2, ref2)
    assert jnp.allclose(sat.targets[index], t2, rtol=1e-3, atol=1e-3)

    print("KERNEL_OK")
</pallas_src>

<mosaic_0001>
module attributes {stable_mosaic.version = 11 : i64} {
  func.func @_bce_loss_kernel(%arg0: i32, %arg1: memref<8x128xf32, #tpu.memory_space<vmem>>, %arg2: memref<8x128xf32, #tpu.memory_space<vmem>>, %arg3: memref<1x1xf32, #tpu.memory_space<vmem>>) attributes {dimension_semantics = [#tpu.dimension_semantics<arbitrary>], iteration_bounds = array<i64: 1>, scalar_prefetch = 0 : i64, scratch_operands = 0 : i64, tpu.core_type = #tpu.core_type<tc>, window_params = [{transform_indices = @transform_0, window_bounds = array<i64: 8, 128>}, {transform_indices = @transform_1, window_bounds = array<i64: 8, 128>}, {pipeline_mode = #tpu.pipeline_mode<synchronous>, transform_indices = @transform_2, window_bounds = array<i64: 1, 1>}]} {
    %c0_i32 = arith.constant 0 : i32
    %0 = arith.cmpi eq, %arg0, %c0_i32 : i32
    %1 = arith.extui %0 : i1 to i32
    %c0_i32_0 = arith.constant 0 : i32
    %2 = arith.cmpi ne, %1, %c0_i32_0 : i32
    scf.if %2 {
      %cst_11 = arith.constant 0.000000e+00 : f32
      %35 = vector.broadcast %cst_11 : f32 to vector<1x1xf32>
      %c0_12 = arith.constant 0 : index
      %c0_13 = arith.constant 0 : index
      %36 = vector.load %arg3[%c0_12, %c0_13] : memref<1x1xf32, #tpu.memory_space<vmem>>, vector<1x1xf32>
      tpu.vector_store %arg3[%c0_12, %c0_13], %35 {strides = array<i32>} : memref<1x1xf32, #tpu.memory_space<vmem>>, vector<1x1xf32>,
    } else {
    }
    %c0 = arith.constant 0 : index
    %c0_1 = arith.constant 0 : index
    %3 = vector.load %arg1[%c0, %c0_1] : memref<8x128xf32, #tpu.memory_space<vmem>>, vector<8x128xf32>
    %c0_2 = arith.constant 0 : index
    %c0_3 = arith.constant 0 : index
    %4 = vector.load %arg2[%c0_2, %c0_3] : memref<8x128xf32, #tpu.memory_space<vmem>>, vector<8x128xf32>
    %5 = math.absf %3 : vector<8x128xf32>
    %cst = arith.constant 0.000000e+00 : f32
    %6 = vector.broadcast %cst : f32 to vector<8x128xf32>
    %7 = arith.subf %6, %5 : vector<8x128xf32>
    %8 = math.exp %7 : vector<8x128xf32>
    %cst_4 = arith.constant 0.000000e+00 : f32
    %9 = vector.broadcast %cst_4 : f32 to vector<8x128xf32>
    %10 = arith.maximumf %3, %9 : vector<8x128xf32>
    %11 = arith.mulf %3, %4 : vector<8x128xf32>
    %12 = arith.subf %10, %11 : vector<8x128xf32>
    %13 = math.log1p %8 : vector<8x128xf32>
    %14 = arith.addf %12, %13 : vector<8x128xf32>
    %c8_i32 = arith.constant 8 : i32
    %15 = arith.muli %arg0, %c8_i32 : i32
    %16 = tpu.iota {dimensions = array<i32: 0>} : vector<8x128xi32>
    %17 = tpu.iota {dimensions = array<i32: 1>} : vector<8x128xi32>
    %18 = vector.broadcast %15 : i32 to vector<8x128xi32>
    %19 = arith.addi %18, %16 : vector<8x128xi32>
    %c128_i32 = arith.constant 128 : i32
    %20 = vector.broadcast %c128_i32 : i32 to vector<8x128xi32>
    %21 = arith.muli %19, %20 : vector<8x128xi32>
    %22 = arith.addi %21, %17 : vector<8x128xi32>
    %c256_i32 = arith.constant 256 : i32
    %23 = vector.broadcast %c256_i32 : i32 to vector<8x128xi32>
    %24 = arith.cmpi slt, %22, %23 : vector<8x128xi32>
    %cst_5 = arith.constant 0.000000e+00 : f32
    %25 = vector.broadcast %cst_5 : f32 to vector<8x128xf32>
    %26 = arith.select %24, %14, %25 : vector<8x128xi1>, vector<8x128xf32>
    %c0_6 = arith.constant 0 : index
    %c0_7 = arith.constant 0 : index
    %27 = vector.load %arg3[%c0_6, %c0_7] : memref<1x1xf32, #tpu.memory_space<vmem>>, vector<1x1xf32>
    %28 = vector.shape_cast %26 : vector<8x128xf32> to vector<1x8x128xf32>
    %cst_8 = arith.constant dense<0.000000e+00> : vector<1xf32>
    %29 = vector.multi_reduction <add>, %28, %cst_8 [1, 2] : vector<1x8x128xf32> to vector<1xf32>
    %30 = vector.shape_cast %29 : vector<1xf32> to vector<1x1x1xf32>
    %31 = vector.extract %30[0, 0, 0] : f32 from vector<1x1x1xf32>
    %32 = vector.broadcast %31 : f32 to vector<1x1xf32>
    %33 = arith.addf %27, %32 : vector<1x1xf32>
    %c0_9 = arith.constant 0 : index
    %c0_10 = arith.constant 0 : index
    %34 = vector.load %arg3[%c0_9, %c0_10] : memref<1x1xf32, #tpu.memory_space<vmem>>, vector<1x1xf32>
    tpu.vector_store %arg3[%c0_9, %c0_10], %33 {strides = array<i32>} : memref<1x1xf32, #tpu.memory_space<vmem>>, vector<1x1xf32>,
    return
  }
  func.func @transform_0(%arg0: i32) -> (i32, i32) {
    %c0_i32 = arith.constant 0 : i32
    %c0_i32_0 = arith.constant 0 : i32
    return %arg0, %c0_i32 : i32, i32
  }
  func.func @transform_1(%arg0: i32) -> (i32, i32) {
    %c0_i32 = arith.constant 0 : i32
    %c0_i32_0 = arith.constant 0 : i32
    return %arg0, %c0_i32 : i32, i32
  }
  func.func @transform_2(%arg0: i32) -> (i32, i32) {
    %c0_i32 = arith.constant 0 : i32
    %c0_i32_0 = arith.constant 0 : i32
    %c0_i32_1 = arith.constant 0 : i32
    return %c0_i32, %c0_i32_0 : i32, i32
  }
}

</mosaic_0001>

<bundles_post_ra>
// kernel: sat_bce_pallas.1
= control target key start
LH: loop header
LB: loop body
LE: loop exit
PB: predicated region body
PF: predicated region fallthrough
CT: control target
= control target key end

     0   :  { %s134_s0 = inlined_call_operand.vmem [shape: f32[8,128], index: 0, kind: input, shape index: {}]   ;;  %s135_s1 = inlined_call_operand.vmem [shape: f32[8,128], index: 1, kind: input, shape index: {}]   ;;  %s136_s2 = inlined_call_operand.hbm [shape: f32[1,1], index: 2, kind: output, shape index: {}]  }
   0x1   :  { %v18_v0 = vld [vmem:[%s134_s0] sm:$0xff] }
   0x2   :  { %7 = vsyncpa [#allocation3], 0  ;;  %v20_v1 = vand.u32 2147483647, %v18_v0  ;;  %v38_v6 = vlaneseq  ;;  %v19_v9 = vld [vmem:[%s135_s1] sm:$0xff]  ;;  %v24_v13 = vmax.f32 %v18_v0, 0.0 }
   0x3   :  { %v25_v14 = vmul.f32 %v19_v9, %v18_v0  ;;  %vm16_vm2 = vcmask 0   ;;  %v106_v24 = vmov 0.0   ;;  %s107_s0 = smov [#allocation2]  }
   0x4   :  { %v21_v2 = vsub.f32 0.0, %v20_v1  ;;  %v39_v8 = vshrl.u32 %v38_v6, 7  ;;  %v41_v11 = vand.u32 127, %v38_v6  ;;  %17 = vst.msk [vmem:[#allocation2] sm:$0x1] %vm16_vm2, %v106_v24  ;;  %s68_s1 = sshll.u32 %s107_s0, 4  ;;  %s69_s1 = int_to_ptr.vmem [resolvable:$true] %s68_s1 }
   0x5   :  { %v26_v19 = vsub.f32 %v24_v13, %v25_v14  ;;  %s84_s14 = scalar_lea.vmem %s69_s1, 16  ;;  %s88_s15 = scalar_lea.vmem %s69_s1, 32 }
   0x6   :  { %v22_v3 = vmul.f32 1.442695, %v21_v2  ;;  %v44_v12 = vmul.u32 128, %v39_v8  ;;  %p85_p0 = scmp.ne.s32.totalorder %s69_s1, %s84_s14  ;;  %p89_p1 = scmp.lt.s32.totalorder %s69_s1, %s69_s1 }
   0x7   :  { %p90_p2 = scmp.lt.s32.totalorder %s88_s15, %s84_s14 }
   0x8   :  { %80 = vpow2.f32 %v22_v3  ;;  %v45_v17 = vadd.s32 %v44_v12, %v41_v11 }
   0x9   :  { %p91_p3 = por %p90_p2, %p89_p1 }
   0xa   :  { %vm46_vm1 = vcmp.lt.s32.totalorder %v45_v17, 256 }
   0xb   :  { %v48_v32 = vld [vmem:[#allocation2] sm:$0x1]  ;;  %p92_p4 = pnand %p91_p3, %p85_p0 }
  0x15   :  { %v81_v4 = vpop.eup %80 }
  0x16   :  { %v27_v5 = vadd.f32 1.0, %v81_v4  ;;  %v30_v7 = vmul.f32 -0.5, %v81_v4  ;;  %v33_v15 = vand.u32 2147483647, %v81_v4 }
  0x18   :  { %82 = vlog2.f32 %v27_v5  ;;  %v31_v10 = vadd.f32 1.0, %v30_v7  ;;  %vm34_vm0 = vcmp.lt.f32.partialorder %v33_v15, 0.0004427343 }
  0x1a   :  { %v32_v16 = vmul.f32 %v81_v4, %v31_v10 }
  0x25   :  { %v83_v18 = vpop.eup %82 }
  0x26   :  { %v29_v20 = vmul.f32 0.6931472, %v83_v18 }
  0x28   :  { %v35_v21 = vsel %vm34_vm0, %v32_v16, %v29_v20 }
  0x29   :  { %v36_v22 = vadd.f32 %v35_v21, %v26_v19 }
  0x2b   :  { %v47_v23 = vsel %vm46_vm1, %v36_v22, 0.0 }
  0x2c   :  { %49 = vadd.xlane.f32.xlu0 %v47_v23 }
  0xb5   :  { %v50_v25 = vpop.xlane.xlu0 %49 }
  0xb6   :  { %v51_v26 = vrot.slane %v50_v25, 4 }
  0xb8   :  { %v52_v27 = vadd.f32 %v51_v26, %v50_v25 }
  0xba   :  { %v53_v28 = vrot.slane %v52_v27, 2 }
  0xbc   :  { %v54_v29 = vadd.f32 %v53_v28, %v52_v27 }
  0xbe   :  { %v55_v30 = vrot.slane %v54_v29, 1 }
  0xc0   :  { %v56_v31 = vadd.f32 %v55_v30, %v54_v29 }
  0xc2   :  { %76 = vpush %v56_v31 }
  0xf3   :  { %s77_s13 = spop %76 }
  0xf4   :  { %v58_v33 = vstv %s77_s13 }
  0xf5   :  { %v59_v34 = vadd.f32 %v58_v33, %v48_v32 }
  0xf7   :  { %61 = vst.msk [vmem:[#allocation2] sm:$0x1] %vm16_vm2, %v59_v34 }
  0xf8   :  { %95 = shalt.err (!%p92_p4)
}
  0xf9   :  { %71 = dma.vmem_to_hbm [thread:$0]  %s69_s1, 16, %s136_s2, [#allocation3]  }
  0xfa   :  { %104 = dma.done.wait [#allocation3], 16  }
  0xfb   :  { %105 = vsyncadd [#allocation3], 4294967280 }
  0xfc   :  { %75 = vsyncpa [#allocation3], 1 }

</bundles_post_ra>
